<compile_context>
chip_gen: v7x
topology: tpu7x:2x2x1
jax: 0.10.0
libtpu: 0.0.40
codegen_flags: <defaults>
</compile_context>

<pallas_src>
import functools
import math

import jax
import jax.numpy as jnp
from jax import lax
from jax.experimental import pallas as pl
from jax.experimental.pallas import tpu as pltpu

_LANE = 128


def _round_up(x, m):
    return (x + m - 1) // m * m


def _tf_same_pad_nchw(x, kh, kw, sh, sw):
    """TF/Keras 'same' padding exactly as the PyTorch module.

    Matches F.pad semantics: negative pad amounts crop instead of raising.
    """
    _, _, H, W = x.shape
    extra_h = (math.ceil(W / sw) - 1) * sw - W + kw
    extra_v = (math.ceil(H / sh) - 1) * sh - H + kh
    left = extra_h // 2
    right = extra_h - left
    top = extra_v // 2
    bottom = extra_v - top
    x = x[:, :, max(0, -top): H - max(0, -bottom),
             max(0, -left): W - max(0, -right)]
    x = jnp.pad(x, ((0, 0), (0, 0),
                    (max(0, top), max(0, bottom)),
                    (max(0, left), max(0, right))))
    return x


def _pick_batch_block(n, oh, target_m=256):
    """Largest divisor of n with B_blk*OH <= target_m, preferring >= 2 grid tiles
    (v7x has 2 TensorCores and shards 'parallel' grid axes across them)."""
    cap = max(1, target_m // max(oh, 1))
    divisors = [d for d in range(1, n + 1) if n % d == 0]
    cands = [d for d in divisors if d <= cap and n // d >= 2]
    if not cands:
        cands = [d for d in divisors if d <= cap] or [1]
    return max(cands)


def _conv_banded_kernel(x_ref, c_ref, b_ref, o_ref, *, kh_taps):
    # x_ref : (KH, M, CWp)   bf16 pre-shifted row planes for this batch tile
    # c_ref : (KH, CWp, COp) bf16 banded weights (VMEM-resident, constant index_map)
    # b_ref : (1, COp)       f32 bias row (co-major, ow-minor, zero in padding lanes)
    # o_ref : (M, COp)       f32 output block (lane-dense, unmasked stores)
    acc = jnp.dot(x_ref[0], c_ref[0], preferred_element_type=jnp.float32)
    for kh in range(1, kh_taps):
        acc = acc + jnp.dot(x_ref[kh], c_ref[kh],
                            preferred_element_type=jnp.float32)
    o_ref[...] = (acc + b_ref[...]).astype(o_ref.dtype)


def _prepare_banded_params(weight, bias, Wp, OW, sw, CWp, COp):
    """Banded weight + bias row. Depends only on weights / static shapes:
    in a real model build this once at weight-load time and reuse per forward."""
    Cout, Cin, KH, KW = weight.shape
    CW = Cin * Wp
    CO = Cout * OW
    # cmat[kh, ci*Wp + jw, co*OW + ow] = W[co,ci,kh,kw] iff jw == ow*sw + kw
    kw_idx = jnp.arange(KW)[:, None, None]
    jw_idx = jnp.arange(Wp)[None, :, None]
    ow_idx = jnp.arange(OW)[None, None, :]
    sel = (jw_idx == ow_idx * sw + kw_idx).astype(jnp.float32)        # (KW, Wp, OW)
    cmat = jnp.einsum('ochw,wjv->hcjov', weight.astype(jnp.float32), sel)
    cmat = cmat.reshape(KH, CW, CO)
    cmat = jnp.pad(cmat, ((0, 0), (0, CWp - CW), (0, COp - CO)))
    cmat = cmat.astype(jnp.bfloat16)                                  # exact bf16(weight)

    if bias is None:
        bias = jnp.zeros((Cout,), jnp.float32)
    b_row = jnp.repeat(bias.astype(jnp.float32), OW)                  # co-major, ow-minor
    b_row = jnp.pad(b_row, (0, COp - CO)).reshape(1, COp)
    return cmat, b_row


def conv2d_static_same_padding(x, weight, bias, stride):
    """x: (N, Cin, H, W), weight: (Cout, Cin, KH, KW), bias: (Cout,) or None."""
    N, Cin, H, W = x.shape
    Cout, _, KH, KW = weight.shape
    sh, sw = stride

    # TODO(synk): groups != 1 / dilation != 1 (non-default module args) are not supported.

    x_pad = _tf_same_pad_nchw(x, KH, KW, sh, sw)
    Hp, Wp = int(x_pad.shape[2]), int(x_pad.shape[3])
    OH = (Hp - KH) // sh + 1
    OW = (Wp - KW) // sw + 1

    CW = Cin * Wp                      # matmul contraction dim (unpadded)
    CO = Cout * OW                     # matmul output/lane dim (unpadded)
    CWp = _round_up(CW, _LANE)         # 128-lane aligned contraction
    COp = _round_up(CO, _LANE)         # 128-lane aligned output (unmasked vst)

    cmat, b_row = _prepare_banded_params(weight, bias, Wp, OW, sw, CWp, COp)

    # ---- JAX layout prep: ~KH/sh x input size, no KH*KW im2col expansion ----
    # Flatten each padded row to (ci, jw) ci-major; pad lane dim to CWp.
    x_rows = jnp.transpose(x_pad, (0, 2, 1, 3)).reshape(N, Hp, CW)     # (N, Hp, Cin*Wp)
    x_rows = jnp.pad(x_rows, ((0, 0), (0, 0), (0, CWp - CW)))
    # Pre-shifted planes: plane[kh][n, oh, :] = x_rows[n, oh*sh + kh, :]
    planes = [x_rows[:, kh:kh + (OH - 1) * sh + 1:sh, :] for kh in range(KH)]
    xshift = jnp.stack(planes, axis=1)                                 # (N, KH, OH, CWp)

    B_blk = _pick_batch_block(N, OH)
    n_tiles = N // B_blk
    M = B_blk * OH                                                     # matmul M dim
    xshift = xshift.reshape(n_tiles, B_blk, KH, OH, CWp)
    xshift = xshift.transpose(0, 2, 1, 3, 4).reshape(n_tiles, KH, M, CWp)
    xshift = xshift.astype(jnp.bfloat16)

    kernel = functools.partial(_conv_banded_kernel, kh_taps=KH)

    # TODO(synk): for very large layers (huge OH*Cout*OW or a banded weight that does
    # not fit VMEM-resident, and for N == 1 on v7x), add parallel OH / CO tile axes.
    out = pl.pallas_call(
        kernel,
        out_shape=jax.ShapeDtypeStruct((n_tiles, M, COp), jnp.float32),
        grid_spec=pltpu.PrefetchScalarGridSpec(
            num_scalar_prefetch=0,
            grid=(n_tiles,),                                    # batch tiles: parallel
            in_specs=[
                pl.BlockSpec((None, KH, M, CWp), lambda b: (b, 0, 0, 0)),   # x planes
                pl.BlockSpec((KH, CWp, COp), lambda b: (0, 0, 0)),          # resident W
                pl.BlockSpec((1, COp), lambda b: (0, 0)),                   # bias row
            ],
            out_specs=pl.BlockSpec((None, M, COp), lambda b: (b, 0, 0)),
        ),
        compiler_params=pltpu.CompilerParams(
            dimension_semantics=("parallel",),
            vmem_limit_bytes=48 * 1024 * 1024,   # safe on v7x (64 MiB), roomy on v5e/v6e
        ),
    )(xshift, cmat, b_row)

    # (n_tiles, B_blk*OH, Cout*OW[+pad]) -> NCHW: slice padding, cheap transpose.
    out = out[:, :, :CO].reshape(N, OH, Cout, OW)
    return jnp.transpose(out, (0, 2, 1, 3)).astype(x.dtype)


if __name__ == "__main__":
    # Module config: Conv2dStaticSamePadding(4, 8, kernel_size=3, stride=2, bias=True)
    N, Cin, H, W = 2, 4, 16, 16
    Cout, KH, KW = 8, 3, 3
    stride = (2, 2)

    key = jax.random.PRNGKey(0)
    kx, kw_, kb = jax.random.split(key, 3)
    x = jax.random.normal(kx, (N, Cin, H, W), dtype=jnp.float32)
    fan_in = Cin * KH * KW
    bound = 1.0 / math.sqrt(fan_in)
    weight = jax.random.uniform(kw_, (Cout, Cin, KH, KW), jnp.float32, -bound, bound)
    bias = jax.random.uniform(kb, (Cout,), jnp.float32, -bound, bound)

    fn = jax.jit(lambda a, w, b: conv2d_static_same_padding(a, w, b, stride))
    y = jax.block_until_ready(fn(x, weight, bias))

    # Reference: same bf16-rounded operands as the kernel streams (bf16 x, bf16 w,
    # f32 accumulation), computed with full-precision lax.conv.
    xq = x.astype(jnp.bfloat16).astype(jnp.float32)
    wq = weight.astype(jnp.bfloat16).astype(jnp.float32)
    x_pad_ref = _tf_same_pad_nchw(xq, KH, KW, *stride)
    ref = lax.conv_general_dilated(
        x_pad_ref, wq, window_strides=stride, padding="VALID",
        dimension_numbers=("NCHW", "OIHW", "NCHW"),
        precision=lax.Precision.HIGHEST,
    ) + bias.reshape(1, Cout, 1, 1)

    assert y.shape == ref.shape, (y.shape, ref.shape)
    max_err = float(jnp.max(jnp.abs(y - ref)))
    assert jnp.allclose(y, ref, atol=1e-3, rtol=1e-3), max_err
    print("KERNEL_OK")
</pallas_src>

<mosaic_0001>
module attributes {stable_mosaic.version = 11 : i64} {
  func.func @_conv_banded_kernel(%arg0: i32, %arg1: memref<1x3x8x128xbf16, #tpu.memory_space<vmem>>, %arg2: memref<3x128x128xbf16, #tpu.memory_space<vmem>>, %arg3: memref<1x128xf32, #tpu.memory_space<vmem>>, %arg4: memref<1x8x128xf32, #tpu.memory_space<vmem>>) attributes {dimension_semantics = [#tpu.dimension_semantics<parallel>], iteration_bounds = array<i64: 2>, scalar_prefetch = 0 : i64, scratch_operands = 0 : i64, tpu.core_type = #tpu.core_type<tc>, window_params = [{transform_indices = @transform_0, window_bounds = array<i64: 1, 3, 8, 128>}, {pipeline_mode = #tpu.pipeline_mode<synchronous>, transform_indices = @transform_1, window_bounds = array<i64: 3, 128, 128>}, {pipeline_mode = #tpu.pipeline_mode<synchronous>, transform_indices = @transform_2, window_bounds = array<i64: 1, 128>}, {transform_indices = @transform_3, window_bounds = array<i64: 1, 8, 128>}]} {
    %c0 = arith.constant 0 : index
    %c0_0 = arith.constant 0 : index
    %c0_1 = arith.constant 0 : index
    %c0_2 = arith.constant 0 : index
    %0 = vector.load %arg1[%c0, %c0_0, %c0_1, %c0_2] : memref<1x3x8x128xbf16, #tpu.memory_space<vmem>>, vector<1x1x8x128xbf16>
    %1 = vector.shape_cast %0 : vector<1x1x8x128xbf16> to vector<8x128xbf16>
    %c0_3 = arith.constant 0 : index
    %c0_4 = arith.constant 0 : index
    %c0_5 = arith.constant 0 : index
    %2 = vector.load %arg2[%c0_3, %c0_4, %c0_5] : memref<3x128x128xbf16, #tpu.memory_space<vmem>>, vector<1x128x128xbf16>
    %3 = vector.shape_cast %2 : vector<1x128x128xbf16> to vector<128x128xbf16>
    %cst = arith.constant dense<0.000000e+00> : vector<8x128xf32>
    %4 = tpu.matmul %1, %3, %cst {dimension_numbers = #tpu.dot_dimension_numbers<[1], [0], [0], [1], [0, 0, 1, 1], [], []>} : vector<8x128xbf16>, vector<128x128xbf16>, vector<8x128xf32> -> vector<8x128xf32>
    %c0_6 = arith.constant 0 : index
    %c1 = arith.constant 1 : index
    %c0_7 = arith.constant 0 : index
    %c0_8 = arith.constant 0 : index
    %5 = vector.load %arg1[%c0_6, %c1, %c0_7, %c0_8] : memref<1x3x8x128xbf16, #tpu.memory_space<vmem>>, vector<1x1x8x128xbf16>
    %6 = vector.shape_cast %5 : vector<1x1x8x128xbf16> to vector<8x128xbf16>
    %c1_9 = arith.constant 1 : index
    %c0_10 = arith.constant 0 : index
    %c0_11 = arith.constant 0 : index
    %7 = vector.load %arg2[%c1_9, %c0_10, %c0_11] : memref<3x128x128xbf16, #tpu.memory_space<vmem>>, vector<1x128x128xbf16>
    %8 = vector.shape_cast %7 : vector<1x128x128xbf16> to vector<128x128xbf16>
    %cst_12 = arith.constant dense<0.000000e+00> : vector<8x128xf32>
    %9 = tpu.matmul %6, %8, %cst_12 {dimension_numbers = #tpu.dot_dimension_numbers<[1], [0], [0], [1], [0, 0, 1, 1], [], []>} : vector<8x128xbf16>, vector<128x128xbf16>, vector<8x128xf32> -> vector<8x128xf32>
    %10 = arith.addf %4, %9 : vector<8x128xf32>
    %c0_13 = arith.constant 0 : index
    %c2 = arith.constant 2 : index
    %c0_14 = arith.constant 0 : index
    %c0_15 = arith.constant 0 : index
    %11 = vector.load %arg1[%c0_13, %c2, %c0_14, %c0_15] : memref<1x3x8x128xbf16, #tpu.memory_space<vmem>>, vector<1x1x8x128xbf16>
    %12 = vector.shape_cast %11 : vector<1x1x8x128xbf16> to vector<8x128xbf16>
    %c2_16 = arith.constant 2 : index
    %c0_17 = arith.constant 0 : index
    %c0_18 = arith.constant 0 : index
    %13 = vector.load %arg2[%c2_16, %c0_17, %c0_18] : memref<3x128x128xbf16, #tpu.memory_space<vmem>>, vector<1x128x128xbf16>
    %14 = vector.shape_cast %13 : vector<1x128x128xbf16> to vector<128x128xbf16>
    %cst_19 = arith.constant dense<0.000000e+00> : vector<8x128xf32>
    %15 = tpu.matmul %12, %14, %cst_19 {dimension_numbers = #tpu.dot_dimension_numbers<[1], [0], [0], [1], [0, 0, 1, 1], [], []>} : vector<8x128xbf16>, vector<128x128xbf16>, vector<8x128xf32> -> vector<8x128xf32>
    %16 = arith.addf %10, %15 : vector<8x128xf32>
    %c0_20 = arith.constant 0 : index
    %c0_21 = arith.constant 0 : index
    %17 = vector.load %arg3[%c0_20, %c0_21] : memref<1x128xf32, #tpu.memory_space<vmem>>, vector<1x128xf32>
    %18 = vector.broadcast %17 : vector<1x128xf32> to vector<8x128xf32>
    %19 = arith.addf %16, %18 : vector<8x128xf32>
    %c0_22 = arith.constant 0 : index
    %c0_23 = arith.constant 0 : index
    %c0_24 = arith.constant 0 : index
    %20 = vector.load %arg4[%c0_22, %c0_23, %c0_24] : memref<1x8x128xf32, #tpu.memory_space<vmem>>, vector<1x8x128xf32>
    %21 = vector.shape_cast %20 : vector<1x8x128xf32> to vector<8x128xf32>
    %22 = vector.shape_cast %19 : vector<8x128xf32> to vector<1x8x128xf32>
    tpu.vector_store %arg4[%c0_22, %c0_23, %c0_24], %22 {strides = array<i32>} : memref<1x8x128xf32, #tpu.memory_space<vmem>>, vector<1x8x128xf32>,
    return
  }
  func.func @transform_0(%arg0: i32) -> (i32, i32, i32, i32) {
    %c0_i32 = arith.constant 0 : i32
    %c0_i32_0 = arith.constant 0 : i32
    %c0_i32_1 = arith.constant 0 : i32
    %c0_i32_2 = arith.constant 0 : i32
    return %arg0, %c0_i32, %c0_i32_0, %c0_i32_1 : i32, i32, i32, i32
  }
  func.func @transform_1(%arg0: i32) -> (i32, i32, i32) {
    %c0_i32 = arith.constant 0 : i32
    %c0_i32_0 = arith.constant 0 : i32
    %c0_i32_1 = arith.constant 0 : i32
    %c0_i32_2 = arith.constant 0 : i32
    return %c0_i32, %c0_i32_0, %c0_i32_1 : i32, i32, i32
  }
  func.func @transform_2(%arg0: i32) -> (i32, i32) {
    %c0_i32 = arith.constant 0 : i32
    %c0_i32_0 = arith.constant 0 : i32
    %c0_i32_1 = arith.constant 0 : i32
    return %c0_i32, %c0_i32_0 : i32, i32
  }
  func.func @transform_3(%arg0: i32) -> (i32, i32, i32) {
    %c0_i32 = arith.constant 0 : i32
    %c0_i32_0 = arith.constant 0 : i32
    %c0_i32_1 = arith.constant 0 : i32
    return %arg0, %c0_i32, %c0_i32_0 : i32, i32, i32
  }
}

</mosaic_0001>

<bundles_post_ra>
// kernel: _lambda_.1
= control target key start
LH: loop header
LB: loop body
LE: loop exit
PB: predicated region body
PF: predicated region fallthrough
CT: control target
= control target key end

     0   :  { %s772_s12 = smov 0   ;;  %s907_s0 = inlined_call_operand.vmem [shape: bf16[2,3,8,128], index: 0, kind: input, shape index: {}]   ;;  %s908_s1 = inlined_call_operand.vmem [shape: bf16[3,128,128], index: 1, kind: input, shape index: {}]   ;;  %s909_s2 = inlined_call_operand.vmem [shape: f32[1,128], index: 2, kind: input, shape index: {}]   ;;  %s910_s3 = inlined_call_operand.vmem [shape: f32[2,8,128], index: 3, kind: output, shape index: {}]  }
   0x1 LB: > { %s552_s13 = sadd.s32 4294967295, %s748_s12   ;;  %p556_p0 = scmp.ge.s32.totalorder %s748_s12, 1  ;;  %s748_s12 = sphi %s772_s12, %s13_s12  }
   0x2   : > { %p137_p1 = scmp.lt.s32.totalorder %s748_s12, 3 }
   0x4   : > { %p138_p2 = pnand %p556_p0, %p137_p1 }
   0x5   : > { %v718_v0 = vld [vmem:[%s908_s1 + $0x40] sm:$0xff] (!%p138_p2)   ;;  %v750_v1 = vmov (!%p138_p2), 0.0   ;;  %v720_v3 = vld [vmem:[%s908_s1 + $0x48] sm:$0xff] (!%p138_p2)   ;;  %vm751_vm0 = vmmov (!%p138_p2), 0   ;;  %v722_v5 = vld [vmem:[%s908_s1 + $0x50] sm:$0xff] (!%p138_p2)   ;;  %p160_p3 = scmp.lt.s32.totalorder (!%p138_p2), %s552_s13, 1 }
   0x6   : > { %141 = sbr.rel (%p138_p2) target bundleno = 287 (0x11f), region = 32  ;;  %647 = vmatprep.subr.bf16.mxu0 (!%p138_p2), %v750_v1  ;;  %667 = vmatprep.subr.bf16.mxu1 (!%p138_p2), %v750_v1  ;;  %v719_v2 = vld [vmem:[%s908_s1] sm:$0xff] (!%p138_p2)   ;;  %v721_v4 = vld [vmem:[%s908_s1 + $0x8] sm:$0xff] (!%p138_p2)   ;;  %v723_v6 = vld [vmem:[%s908_s1 + $0x10] sm:$0xff] (!%p138_p2)  }
   0x7   : > { %648 = vmatpush3.bf16.msra.mxu0 (!%p138_p2), %v718_v0  ;;  %663 = vmatprep.mubr.msk.bf16.mxu0 (!%p138_p2), %vm751_vm0, %v750_v1  ;;  %v724_v7 = vld [vmem:[%s908_s1 + $0x58] sm:$0xff] (!%p138_p2)   ;;  %v726_v9 = vld [vmem:[%s908_s1 + $0x60] sm:$0xff] (!%p138_p2)   ;;  %v728_v11 = vld [vmem:[%s908_s1 + $0x68] sm:$0xff] (!%p138_p2)  }
   0x8   : > { %668 = vmatpush3.bf16.msra.mxu1 (!%p138_p2), %v719_v2  ;;  %649 = vmatprep.subr.bf16.mxu0 (!%p138_p2), %v750_v1  ;;  %v725_v8 = vld [vmem:[%s908_s1 + $0x18] sm:$0xff] (!%p138_p2)   ;;  %v727_v10 = vld [vmem:[%s908_s1 + $0x20] sm:$0xff] (!%p138_p2)   ;;  %v729_v12 = vld [vmem:[%s908_s1 + $0x28] sm:$0xff] (!%p138_p2)  }
   0x9   : > { %669 = vmatprep.subr.bf16.mxu1 (!%p138_p2), %v750_v1  ;;  %683 = vmatprep.mubr.msk.bf16.mxu1 (!%p138_p2), %vm751_vm0, %v750_v1  ;;  %v730_v13 = vld [vmem:[%s908_s1 + $0x70] sm:$0xff] (!%p138_p2)   ;;  %v732_v15 = vld [vmem:[%s908_s1 + $0x78] sm:$0xff] (!%p138_p2)   ;;  %v734_v18 = vld [vmem:[%s908_s1 + $0x80] sm:$0xff] (!%p138_p2)  }
   0xa   : > { %v731_v14 = vld [vmem:[%s908_s1 + $0x30] sm:$0xff] (!%p138_p2)   ;;  %v733_v16 = vld [vmem:[%s908_s1 + $0x38] sm:$0xff] (!%p138_p2)   ;;  %v735_v20 = vld [vmem:[%s908_s1 + $0x88] sm:$0xff] (!%p138_p2)  }
   0xb   : > { %650 = vmatpush3.bf16.msra.mxu0 (!%p138_p2), %v720_v3  ;;  %v736_v21 = vld [vmem:[%s908_s1 + $0x90] sm:$0xff] (!%p138_p2)   ;;  %v737_v22 = vld [vmem:[%s908_s1 + $0x98] sm:$0xff] (!%p138_p2)   ;;  %v738_v23 = vld [vmem:[%s908_s1 + $0xa0] sm:$0xff] (!%p138_p2)  }
   0xc   : > { %670 = vmatpush3.bf16.msra.mxu1 (!%p138_p2), %v721_v4  ;;  %651 = vmatprep.subr.bf16.mxu0 (!%p138_p2), %v750_v1  ;;  %v739_v24 = vld [vmem:[%s908_s1 + $0xa8] sm:$0xff] (!%p138_p2)   ;;  %v740_v25 = vld [vmem:[%s908_s1 + $0xb0] sm:$0xff] (!%p138_p2)   ;;  %v741_v26 = vld [vmem:[%s908_s1 + $0xb8] sm:$0xff] (!%p138_p2)  }
   0xd   : > { %671 = vmatprep.subr.bf16.mxu1 %v750_v1  ;;  %s912_s13 = smov (!%p160_p3, %s552_s13), 1  ;;  %v617_v38 = vld [vmem:[%s909_s2] ss:$0 sm:$0xff] }
   0xe   : > { %s707_s17 = smul.u32 12, %s912_s13  ;;  %s558_s16 = sshll.u32 %s912_s13, 3 }
   0xf   : > { %652 = vmatpush3.bf16.msra.mxu0 %v722_v5  ;;  %s168_s21 = scalar_lea.vmem %s910_s3, %s558_s16 }
  0x10   : > { %672 = vmatpush3.bf16.msra.mxu1 %v723_v6  ;;  %653 = vmatprep.subr.bf16.mxu0 %v750_v1  ;;  %s857_s24 = scalar_lea.vmem %s907_s0, %s707_s17 }
  0x11   : > { %673 = vmatprep.subr.bf16.mxu1 %v750_v1  ;;  %v559_v17 = vld [vmem:[%s857_s24 + $0x4] sm:$0xf]  ;;  %v170_v19 = vld [vmem:[%s857_s24] sm:$0xf]  ;;  %v592_v27 = vld [vmem:[%s857_s24 + $0x8] sm:$0xf] }
  0x13   : > { %654 = vmatpush3.bf16.msra.mxu0 %v724_v7 }
  0x14   : > { %674 = vmatpush3.bf16.msra.mxu1 %v725_v8  ;;  %655 = vmatprep.subr.bf16.mxu0 %v750_v1 }
  0x15   : > { %675 = vmatprep.subr.bf16.mxu1 %v750_v1 }
  0x17   : > { %656 = vmatpush3.bf16.msra.mxu0 %v726_v9 }
  0x18   : > { %676 = vmatpush3.bf16.msra.mxu1 %v727_v10  ;;  %657 = vmatprep.subr.bf16.mxu0 %v750_v1 }
  0x19   : > { %677 = vmatprep.subr.bf16.mxu1 %v750_v1 }
  0x1b   : > { %658 = vmatpush3.bf16.msra.mxu0 %v728_v11 }
  0x1c   : > { %678 = vmatpush3.bf16.msra.mxu1 %v729_v12  ;;  %659 = vmatprep.subr.bf16.mxu0 %v750_v1 }
  0x1d   : > { %679 = vmatprep.subr.bf16.mxu1 %v750_v1 }
  0x1f   : > { %660 = vmatpush3.bf16.msra.mxu0 %v730_v13 }
  0x20   : > { %680 = vmatpush3.bf16.msra.mxu1 %v731_v14  ;;  %661 = vmatprep.subr.bf16.mxu0 %v750_v1 }
  0x21   : > { %681 = vmatprep.subr.bf16.mxu1 %v750_v1 }
  0x23   : > { %662 = vmatpush3.bf16.msra.mxu0 %v732_v15 }
  0x24   : > { %682 = vmatpush3.bf16.msra.mxu1 %v733_v16  ;;  %687 = vmatprep.subr.bf16.mxu0 %v750_v1 }
  0x26   : > { %664 = vmatmul.mubr.bf16.vlgmr.msra.gmra.mrb[0].mxu0 %v559_v17 }
  0x27   : > { %684 = vmatmul.mubr.bf16.vlgmr.msra.gmra.mrb[0].mxu1 %v170_v19  ;;  %688 = vmatpush3.bf16.msra.mxu0 %v734_v18 }
  0x28   : > { %689 = vmatprep.subr.bf16.mxu0 %v750_v1  ;;  %703 = vmatprep.mubr.msk.bf16.mxu0 %vm751_vm0, %v750_v1 }
  0x2b   : > { %690 = vmatpush3.bf16.msra.mxu0 %v735_v20 }
  0x2c   : > { %691 = vmatprep.subr.bf16.mxu0 %v750_v1 }
  0x2f   : > { %692 = vmatpush3.bf16.msra.mxu0 %v736_v21 }
  0x30   : > { %693 = vmatprep.subr.bf16.mxu0 %v750_v1 }
  0x33   : > { %694 = vmatpush3.bf16.msra.mxu0 %v737_v22 }
  0x34   : > { %695 = vmatprep.subr.bf16.mxu0 %v750_v1 }
  0x37   : > { %696 = vmatpush3.bf16.msra.mxu0 %v738_v23 }
  0x38   : > { %697 = vmatprep.subr.bf16.mxu0 %v750_v1 }
  0x3b   : > { %698 = vmatpush3.bf16.msra.mxu0 %v739_v24 }
  0x3c   : > { %699 = vmatprep.subr.bf16.mxu0 %v750_v1 }
  0x3f   : > { %700 = vmatpush3.bf16.msra.mxu0 %v740_v25 }
  0x40   : > { %701 = vmatprep.subr.bf16.mxu0 %v750_v1 }
  0x43   : > { %702 = vmatpush3.bf16.msra.mxu0 %v741_v26 }
  0x46   : > { %704 = vmatmul.mubr.bf16.vlgmr.msra.gmra.mrb[4].mxu0 %v592_v27 }
  0xf9   : > { %v288_v28 = vpop.f32.mrb[0].mxu0 }
  0xfa   : > { %v665_v29 = vpop.f32.mrb[1].mxu0  ;;  %v376_v30 = vpop.f32.mrb[0].mxu1 }
  0xfb   : > { %v377_v31 = vadd.f32 %v376_v30, %v288_v28  ;;  %v291_v32 = vpop.f32.mrb[2].mxu0  ;;  %v685_v33 = vpop.f32.mrb[1].mxu1 }
  0xfc   : > { %v666_v34 = vpop.f32.mrb[3].mxu0  ;;  %v379_v35 = vpop.f32.mrb[2].mxu1 }
  0xfd   : > { %v686_v36 = vpop.f32.mrb[3].mxu1 }
 0x119   : > { %v483_v37 = vpop.f32.mrb[4].mxu0 }
 0x11a   : > { %v489_v39 = vadd.f32 %v483_v37, %v377_v31  ;;  %v705_v40 = vpop.f32.mrb[5].mxu0 }
 0x11b   : > { %v486_v41 = vpop.f32.mrb[6].mxu0 }
 0x11c   : > { %v497_v42 = vadd.f32 %v617_v38, %v489_v39  ;;  %v706_v43 = vpop.f32.mrb[7].mxu0 }
 0x11e   : > { %498 = vst [vmem:[%s168_s21] sm:$0xff] %v497_v42 }
 0x11f PF: > { %s13_s12 = sadd.s32 1, %s748_s12  }
 0x120   : > { %p10_p4 = scmp.ge.s32.totalorder %s13_s12, 4  }
 0x122   :  { %12 = sbr.rel (!%p10_p4) target bundleno = 1 (0x1), region = 66 }

</bundles_post_ra>
